<compile_context>
chip_gen: v5e
topology: v5e:2x2
jax: 0.10.0
libtpu: 0.0.40
codegen_flags: <defaults>
</compile_context>

<pallas_src>
import jax
import jax.numpy as jnp
from jax.experimental import pallas as pl
from jax.experimental.pallas import tpu as pltpu


def _add_add_kernel(x103_ref, x88_ref, x119_ref, out_ref):
    # x104 = x103 + x88 ; x120 = x119 + x104  (single fused elementwise pass)
    out_ref[...] = x119_ref[...] + (x103_ref[...] + x88_ref[...])


def add_add(x103, x88, x119):
    """Computes x119 + (x103 + x88) with a single Pallas TPU kernel.

    Note: at this size the op is launch/DMA dominated; in a full model this
    add-add should be fused into the producer/consumer kernel (or left to XLA
    as a plain jnp expression). Kept standalone here to match the module spec.
    """
    assert x103.shape == x88.shape == x119.shape
    assert x103.dtype == x88.dtype == x119.dtype
    orig_shape = x103.shape

    # Flatten to a lane-dense 2D layout: few rows, long last (lane) dim.
    total = 1
    for d in orig_shape:
        total *= d
    rows = 8 if total % 8 == 0 else 1
    cols = total // rows

    x103_2d = x103.reshape(rows, cols)
    x88_2d = x88.reshape(rows, cols)
    x119_2d = x119.reshape(rows, cols)

    # Full-array block (block dims equal the full array dims -> allowed even
    # when not multiples of (8, 128)); no grid at this tiny size.
    spec = pl.BlockSpec((rows, cols), lambda: (0, 0))

    out_2d = pl.pallas_call(
        _add_add_kernel,
        out_shape=jax.ShapeDtypeStruct((rows, cols), x103.dtype),
        grid=(),
        in_specs=[spec, spec, spec],
        out_specs=spec,
        # Donate x119's buffer as the output buffer (write result in place).
        input_output_aliases={2: 0},
    )(x103_2d, x88_2d, x119_2d)

    return out_2d.reshape(orig_shape)


if __name__ == "__main__":
    key = jax.random.PRNGKey(0)
    k1, k2, k3 = jax.random.split(key, 3)
    shape = (1, 80, 14, 14)  # same shapes as the PyTorch module's inputs
    x103 = jax.random.normal(k1, shape, dtype=jnp.float32)
    x88 = jax.random.normal(k2, shape, dtype=jnp.float32)
    x119 = jax.random.normal(k3, shape, dtype=jnp.float32)

    out = add_add(x103, x88, x119)
    jax.block_until_ready(out)

    # Sanity-check against plain JAX reference.
    ref = x119 + (x103 + x88)
    assert out.shape == shape
    assert jnp.allclose(out, ref, atol=1e-6), "mismatch vs reference"

    print("KERNEL_OK")
</pallas_src>

<mosaic_0001>
module attributes {stable_mosaic.version = 11 : i64} {
  func.func @_add_add_kernel(%arg0: memref<8x1960xf32, #tpu.memory_space<vmem>>, %arg1: memref<8x1960xf32, #tpu.memory_space<vmem>>, %arg2: memref<8x1960xf32, #tpu.memory_space<vmem>>, %arg3: memref<8x1960xf32, #tpu.memory_space<vmem>>) attributes {dimension_semantics = [], scalar_prefetch = 0 : i64, scratch_operands = 0 : i64, tpu.core_type = #tpu.core_type<tc>} {
    %c0 = arith.constant 0 : index
    %c0_0 = arith.constant 0 : index
    %0 = vector.load %arg2[%c0, %c0_0] : memref<8x1960xf32, #tpu.memory_space<vmem>>, vector<8x1960xf32>
    %c0_1 = arith.constant 0 : index
    %c0_2 = arith.constant 0 : index
    %1 = vector.load %arg0[%c0_1, %c0_2] : memref<8x1960xf32, #tpu.memory_space<vmem>>, vector<8x1960xf32>
    %c0_3 = arith.constant 0 : index
    %c0_4 = arith.constant 0 : index
    %2 = vector.load %arg1[%c0_3, %c0_4] : memref<8x1960xf32, #tpu.memory_space<vmem>>, vector<8x1960xf32>
    %3 = arith.addf %1, %2 : vector<8x1960xf32>
    %4 = arith.addf %0, %3 : vector<8x1960xf32>
    %c0_5 = arith.constant 0 : index
    %c0_6 = arith.constant 0 : index
    %5 = vector.load %arg3[%c0_5, %c0_6] : memref<8x1960xf32, #tpu.memory_space<vmem>>, vector<8x1960xf32>
    tpu.vector_store %arg3[%c0_5, %c0_6], %4 {strides = array<i32>} : memref<8x1960xf32, #tpu.memory_space<vmem>>, vector<8x1960xf32>,
    return
  }
}

</mosaic_0001>

<bundles_post_ra>
// kernel: tpu_custom_call.1
= control target key start
LH: loop header
LB: loop body
LE: loop exit
PB: predicated region body
PF: predicated region fallthrough
CT: control target
= control target key end

     0   :  { %8 = vsyncpa [#allocation3], 0  ;;  %s321_s0 = inlined_call_operand.vmem [shape: f32[8,1960], index: 0, kind: input, shape index: {}]   ;;  %s322_s1 = inlined_call_operand.vmem [shape: f32[8,1960], index: 1, kind: input, shape index: {}]   ;;  %s323_s2 = inlined_call_operand.hbm [shape: f32[8,1960], index: 2, kind: input, shape index: {}, may-alias: {2,3}]   ;;  %s324_s3 = inlined_call_operand.hbm [shape: f32[8,1960], index: 3, kind: output, shape index: {}, may-alias: {2,3}]  }
   0x1   :  { %9 = vsyncpa [#allocation4], 0  ;;  %s19_s14 = sshll.u32 %s323_s2, 4  ;;  %s197_s15 = smov [#allocation2]   ;;  %s20_s14 = int_to_ptr.hbm [resolvable:$true] %s19_s14 }
   0x2   :  { %s21_s16 = sshll.u32 %s197_s15, 4  ;;  %s22_s16 = int_to_ptr.vmem [resolvable:$true] %s21_s16 }
   0x3   :  { %24 = dma.hbm_to_vmem [thread:$0]  %s20_s14, 2048, %s22_s16, [#allocation3]  }
   0x4   :  { %193 = dma.done.wait [#allocation3], 2048  }
   0x5   :  { %194 = vsyncadd [#allocation3], 4294965248  ;;  %v29_v0 = vld [vmem:[#allocation2] sm:$0xff]  ;;  %v30_v4 = vld [vmem:[#allocation2 + $0x8] sm:$0xff]  ;;  %s198_s24 = smov [#allocation5]   ;;  %s133_s28 = sshll.u32 %s324_s3, 4  ;;  %s134_s28 = int_to_ptr.hbm [resolvable:$true] %s133_s28 }
   0x6   :  { %v45_v1 = vld [vmem:[%s321_s0] sm:$0xff]  ;;  %v46_v5 = vld [vmem:[%s321_s0 + $0x8] sm:$0xff]  ;;  %v31_v8 = vld [vmem:[#allocation2 + $0x10] sm:$0xff]  ;;  %s131_s25 = sshll.u32 %s198_s24, 4  ;;  %vm124_vm0 = vcmask 326656   ;;  %s132_s25 = int_to_ptr.vmem [resolvable:$true] %s131_s25 }
   0x7   :  { %v61_v2 = vld [vmem:[%s322_s1] sm:$0xff]  ;;  %v62_v6 = vld [vmem:[%s322_s1 + $0x8] sm:$0xff]  ;;  %v47_v9 = vld [vmem:[%s321_s0 + $0x10] sm:$0xff] }
   0x8   :  { %v77_v3 = vadd.f32 %v61_v2, %v45_v1  ;;  %v78_v7 = vadd.f32 %v62_v6, %v46_v5  ;;  %v63_v10 = vld [vmem:[%s322_s1 + $0x10] sm:$0xff]  ;;  %v32_v13 = vld [vmem:[#allocation2 + $0x18] sm:$0xff]  ;;  %v33_v18 = vld [vmem:[#allocation2 + $0x20] sm:$0xff] }
   0x9   :  { %v79_v12 = vadd.f32 %v63_v10, %v47_v9  ;;  %v48_v14 = vld [vmem:[%s321_s0 + $0x18] sm:$0xff]  ;;  %v49_v19 = vld [vmem:[%s321_s0 + $0x20] sm:$0xff]  ;;  %v34_v23 = vld [vmem:[#allocation2 + $0x28] sm:$0xff] }
   0xa   :  { %v93_v11 = vadd.f32 %v77_v3, %v29_v0  ;;  %v64_v15 = vld [vmem:[%s322_s1 + $0x18] sm:$0xff]  ;;  %v94_v16 = vadd.f32 %v78_v7, %v30_v4  ;;  %v65_v20 = vld [vmem:[%s322_s1 + $0x20] sm:$0xff]  ;;  %v50_v24 = vld [vmem:[%s321_s0 + $0x28] sm:$0xff] }
   0xb   :  { %v80_v17 = vadd.f32 %v64_v15, %v48_v14  ;;  %v95_v21 = vadd.f32 %v79_v12, %v31_v8  ;;  %v81_v22 = vadd.f32 %v65_v20, %v49_v19  ;;  %v66_v25 = vld [vmem:[%s322_s1 + $0x28] sm:$0xff]  ;;  %v35_v28 = vld [vmem:[#allocation2 + $0x30] sm:$0xff]  ;;  %v36_v33 = vld [vmem:[#allocation2 + $0x38] sm:$0xff] }
   0xc   :  { %109 = vst [vmem:[#allocation5] sm:$0xff] %v93_v11  ;;  %v82_v27 = vadd.f32 %v66_v25, %v50_v24  ;;  %v51_v29 = vld [vmem:[%s321_s0 + $0x30] sm:$0xff]  ;;  %v52_v34 = vld [vmem:[%s321_s0 + $0x38] sm:$0xff]  ;;  %v37_v38 = vld [vmem:[#allocation2 + $0x40] sm:$0xff] }
   0xd   :  { %110 = vst [vmem:[#allocation5 + $0x8] sm:$0xff] %v94_v16  ;;  %v96_v26 = vadd.f32 %v80_v17, %v32_v13  ;;  %v67_v30 = vld [vmem:[%s322_s1 + $0x30] sm:$0xff]  ;;  %v97_v31 = vadd.f32 %v81_v22, %v33_v18  ;;  %v68_v35 = vld [vmem:[%s322_s1 + $0x38] sm:$0xff]  ;;  %v53_v39 = vld [vmem:[%s321_s0 + $0x40] sm:$0xff] }
   0xe   :  { %111 = vst [vmem:[#allocation5 + $0x10] sm:$0xff] %v95_v21  ;;  %v83_v32 = vadd.f32 %v67_v30, %v51_v29  ;;  %v98_v36 = vadd.f32 %v82_v27, %v34_v23  ;;  %v84_v37 = vadd.f32 %v68_v35, %v52_v34  ;;  %v69_v40 = vld [vmem:[%s322_s1 + $0x40] sm:$0xff]  ;;  %v38_v43 = vld [vmem:[#allocation2 + $0x48] sm:$0xff]  ;;  %v39_v48 = vld [vmem:[#allocation2 + $0x50] sm:$0xff] }
   0xf   :  { %112 = vst [vmem:[#allocation5 + $0x18] sm:$0xff] %v96_v26  ;;  %v85_v42 = vadd.f32 %v69_v40, %v53_v39  ;;  %v54_v44 = vld [vmem:[%s321_s0 + $0x48] sm:$0xff]  ;;  %v55_v49 = vld [vmem:[%s321_s0 + $0x50] sm:$0xff]  ;;  %v40_v53 = vld [vmem:[#allocation2 + $0x58] sm:$0xff] }
  0x10   :  { %113 = vst [vmem:[#allocation5 + $0x20] sm:$0xff] %v97_v31  ;;  %v99_v41 = vadd.f32 %v83_v32, %v35_v28  ;;  %v70_v45 = vld [vmem:[%s322_s1 + $0x48] sm:$0xff]  ;;  %v100_v46 = vadd.f32 %v84_v37, %v36_v33  ;;  %v71_v50 = vld [vmem:[%s322_s1 + $0x50] sm:$0xff]  ;;  %v56_v54 = vld [vmem:[%s321_s0 + $0x58] sm:$0xff] }
  0x11   :  { %114 = vst [vmem:[#allocation5 + $0x28] sm:$0xff] %v98_v36  ;;  %v86_v47 = vadd.f32 %v70_v45, %v54_v44  ;;  %v101_v51 = vadd.f32 %v85_v42, %v37_v38  ;;  %v87_v52 = vadd.f32 %v71_v50, %v55_v49  ;;  %v72_v55 = vld [vmem:[%s322_s1 + $0x58] sm:$0xff]  ;;  %v41_v58 = vld [vmem:[#allocation2 + $0x60] sm:$0xff]  ;;  %v42_v63 = vld [vmem:[#allocation2 + $0x68] sm:$0xff] }
  0x12   :  { %115 = vst [vmem:[#allocation5 + $0x30] sm:$0xff] %v99_v41  ;;  %v88_v57 = vadd.f32 %v72_v55, %v56_v54  ;;  %v57_v59 = vld [vmem:[%s321_s0 + $0x60] sm:$0xff]  ;;  %v58_v0 = vld [vmem:[%s321_s0 + $0x68] sm:$0xff]  ;;  %v43_v4 = vld [vmem:[#allocation2 + $0x70] sm:$0xff] }
  0x13   :  { %116 = vst [vmem:[#allocation5 + $0x38] sm:$0xff] %v100_v46  ;;  %v102_v56 = vadd.f32 %v86_v47, %v38_v43  ;;  %v73_v60 = vld [vmem:[%s322_s1 + $0x60] sm:$0xff]  ;;  %v103_v61 = vadd.f32 %v87_v52, %v39_v48  ;;  %v74_v1 = vld [vmem:[%s322_s1 + $0x68] sm:$0xff]  ;;  %v59_v5 = vld [vmem:[%s321_s0 + $0x70] sm:$0xff] }
  0x14   :  { %117 = vst [vmem:[#allocation5 + $0x40] sm:$0xff] %v101_v51  ;;  %v89_v62 = vadd.f32 %v73_v60, %v57_v59  ;;  %v104_v2 = vadd.f32 %v88_v57, %v40_v53  ;;  %v90_v3 = vadd.f32 %v74_v1, %v58_v0  ;;  %v75_v6 = vld [vmem:[%s322_s1 + $0x70] sm:$0xff]  ;;  %v44_v9 = vld [vmem:[#allocation2 + $0x78] sm:$0xff] }
  0x15   :  { %118 = vst [vmem:[#allocation5 + $0x48] sm:$0xff] %v102_v56  ;;  %v91_v8 = vadd.f32 %v75_v6, %v59_v5  ;;  %v60_v10 = vld [vmem:[%s321_s0 + $0x78] sm:$0xff] }
  0x16   :  { %119 = vst [vmem:[#allocation5 + $0x50] sm:$0xff] %v103_v61  ;;  %v105_v7 = vadd.f32 %v89_v62, %v41_v58  ;;  %v76_v11 = vld [vmem:[%s322_s1 + $0x78] sm:$0xff]  ;;  %v106_v12 = vadd.f32 %v90_v3, %v42_v63 }
  0x17   :  { %120 = vst [vmem:[#allocation5 + $0x58] sm:$0xff] %v104_v2  ;;  %v92_v13 = vadd.f32 %v76_v11, %v60_v10  ;;  %v107_v14 = vadd.f32 %v91_v8, %v43_v4 }
  0x18   :  { %121 = vst [vmem:[#allocation5 + $0x60] sm:$0xff] %v105_v7 }
  0x19   :  { %122 = vst [vmem:[#allocation5 + $0x68] sm:$0xff] %v106_v12  ;;  %v108_v15 = vadd.f32 %v92_v13, %v44_v9 }
  0x1a   :  { %123 = vst [vmem:[#allocation5 + $0x70] sm:$0xff] %v107_v14 }
  0x1b   :  { %125 = vst.msk [vmem:[#allocation5 + $0x78] sm:$0xff] %vm124_vm0, %v108_v15 }
  0x1c   :  { %136 = dma.vmem_to_hbm [thread:$0]  %s132_s25, 2048, %s134_s28, [#allocation4]  }
  0x1d   :  { %195 = dma.done.wait [#allocation4], 2048  }
  0x1e   :  { %196 = vsyncadd [#allocation4], 4294965248 }
  0x1f   :  { %141 = vsyncpa [#allocation3], 1 }
  0x20   :  { %142 = vsyncpa [#allocation4], 1 }

</bundles_post_ra>
